<compile_context>
chip_gen: v7x
topology: tpu7x:2x2x1
jax: 0.10.0
libtpu: 0.0.40
codegen_flags: <defaults>
</compile_context>

<pallas_src>
import functools

import numpy as np

import jax
import jax.numpy as jnp
from jax.experimental import pallas as pl
from jax.experimental.pallas import tpu as pltpu

# OGB bond feature dims (get_bond_feature_dims()): [bond_type, stereo, conjugated]
FULL_BOND_FEATURE_DIMS = (5, 6, 2)
_OFFSETS = (0, 5, 11)                      # cumulative offsets into concat table
V_TOTAL = sum(FULL_BOND_FEATURE_DIMS)      # 13 rows in the concatenated table
NUM_FEATS = len(FULL_BOND_FEATURE_DIMS)    # 3


def _round_up(x, m):
    return ((x + m - 1) // m) * m


def _bond_encoder_kernel(idx_ref, smat_ref, table_ref, out_ref):
    # idx_ref:   (TR, PACK*(F+1)) int32  -- PACK edges per row, each [f0,f1,f2,1]
    # smat_ref:  (PACK*(F+1), PACK*V) bf16 -- segment-spread + offset matrix
    # table_ref: (PACK*V, PACK*D) f32    -- block-diag concatenated embedding table
    # out_ref:   (TR, PACK*D)            -- edge PACK*k + j in lanes [j*D, (j+1)*D)
    x = idx_ref[...].astype(jnp.bfloat16)          # small ints, exact in bf16

    # t_map[k, v] = idx_of_edge(v//13)[feature(v%13)] + column_base(v); built with
    # one cheap bf16 MXU matmul (exact: sums of two small integers, f32 acc).
    t_map = jnp.dot(x, smat_ref[...], preferred_element_type=jnp.float32)

    # Multi-hot in a single compare: column v is hot iff v equals its own target.
    col = jax.lax.broadcasted_iota(jnp.int32, t_map.shape, 1)
    hot = (col == t_map.astype(jnp.int32)).astype(jnp.float32)

    # Summed per-feature lookup == multi-hot @ block-diag table.  HIGHEST keeps
    # full f32 accuracy for the embedding values on the bf16-native MXU.
    out_ref[...] = jnp.dot(hot, table_ref[...],
                           preferred_element_type=jnp.float32,
                           precision=jax.lax.Precision.HIGHEST).astype(out_ref.dtype)


@functools.partial(jax.jit, static_argnames=("tile_e", "out_dtype"))
def bond_encoder(edge_attr, smat, table_bd, *, tile_e=16384, out_dtype=jnp.float32):
    """edge_attr: (E, F) int features; smat/table_bd from init_bond_encoder_params."""
    E, F = edge_attr.shape
    n_sel, K = smat.shape                 # n_sel = PACK*(F+1), K = PACK*V_TOTAL
    pack = n_sel // (F + 1)
    D4 = table_bd.shape[1]                # PACK * emb_dim
    D = D4 // pack
    align = 8 * pack                      # packed sublane dim stays a multiple of 8

    idx = edge_attr if edge_attr.dtype == jnp.int32 else edge_attr.astype(jnp.int32)

    # Pad only to the packing alignment (<= align-1 rows, index 0 is valid) and
    # append the constant-1 column that carries smat's offset row -- one fused pad.
    Ep = _round_up(E, align)
    idx = jnp.pad(idx, ((0, Ep - E), (0, 1)), constant_values=((0, 0), (0, 1)))
    idx_packed = idx.reshape(Ep // pack, pack * (F + 1))
    rows_total = Ep // pack

    # Tile: large enough to amortize per-step pipeline overhead (>= ~2 MiB output
    # block), clamped so the "parallel" grid keeps >= MIN_STEPS steps for v7x's
    # two TensorCores.
    MIN_STEPS = 8
    max_tile = _round_up(pl.cdiv(Ep, MIN_STEPS), align)
    tile_e = max(align, _round_up(min(tile_e, max_tile), align))
    rows_per_tile = min(tile_e // pack, rows_total)
    grid = (pl.cdiv(rows_total, rows_per_tile),)   # final block may be partial

    out_packed = pl.pallas_call(
        _bond_encoder_kernel,
        out_shape=jax.ShapeDtypeStruct((rows_total, D4), out_dtype),
        grid_spec=pltpu.PrefetchScalarGridSpec(
            num_scalar_prefetch=0,
            grid=grid,
            in_specs=[
                pl.BlockSpec((rows_per_tile, pack * (F + 1)), lambda i: (i, 0)),
                # Tiny constant operands; constant index map keeps them resident.
                pl.BlockSpec((n_sel, K), lambda i: (0, 0)),
                pl.BlockSpec((K, D4), lambda i: (0, 0)),
            ],
            out_specs=pl.BlockSpec((rows_per_tile, D4), lambda i: (i, 0)),
        ),
        compiler_params=pltpu.CompilerParams(
            dimension_semantics=("parallel",)),
    )(idx_packed, smat, table_bd)

    out = out_packed.reshape(Ep, D)       # free row-major un-packing
    if Ep != E:                           # only when E % (8*pack) != 0
        out = out[:E]
    return out


def init_bond_encoder_params(emb_dim, key, pack=None):
    """Xavier-uniform init of each Embedding(dim, emb_dim).  Returns:
       smat     (PACK*(F+1), PACK*V) bf16  segment-spread + offset matrix,
       table_bd (PACK*V, PACK*emb_dim) f32 block-diag concatenated table,
       tables   list of per-feature (dim, emb_dim) f32 tables (for reference)."""
    if pack is None:
        pack = max(1, 256 // emb_dim)     # lane-dense packed output rows

    tables = []
    for dim in FULL_BOND_FEATURE_DIMS:
        key, sub = jax.random.split(key)
        bound = (6.0 / (dim + emb_dim)) ** 0.5
        tables.append(jax.random.uniform(sub, (dim, emb_dim), jnp.float32,
                                         minval=-bound, maxval=bound))
    concat = jnp.concatenate(tables, axis=0)                         # (V, D)
    V = concat.shape[0]

    # Block-diagonal (pack*V, pack*D) table (built once at init time).
    eye = jnp.eye(pack, dtype=concat.dtype)
    table_bd = jnp.einsum('pq,vd->pvqd', eye, concat).reshape(pack * V,
                                                              pack * emb_dim)

    # Segment-spread matrix: column v (block j = v//V, r = v%V, feature f(r)):
    #   smat[j*(F+1)+f, v] = 1           (selects that edge's feature index)
    #   smat[j*(F+1)+F, v] = j*V + off_f (constant column base, via ones column)
    smat = np.zeros((pack * (NUM_FEATS + 1), pack * V), np.float32)
    for j in range(pack):
        for f, dim in enumerate(FULL_BOND_FEATURE_DIMS):
            lo = j * V + _OFFSETS[f]
            smat[j * (NUM_FEATS + 1) + f, lo:lo + dim] = 1.0
            smat[j * (NUM_FEATS + 1) + NUM_FEATS, lo:lo + dim] = float(lo)
    smat = jnp.asarray(smat, jnp.bfloat16)   # all entries <= 102: exact in bf16

    return smat, table_bd, tables


def _reference(edge_attr, tables):
    ref = jnp.zeros((edge_attr.shape[0], tables[0].shape[1]), jnp.float32)
    for f in range(edge_attr.shape[1]):
        ref = ref + tables[f][edge_attr[:, f]]
    return ref


def _make_edge_attr(key, num_edges):
    cols = []
    for dim in FULL_BOND_FEATURE_DIMS:
        key, sub = jax.random.split(key)
        cols.append(jax.random.randint(sub, (num_edges, 1), 0, dim, jnp.int32))
    return jnp.concatenate(cols, axis=1)


if __name__ == "__main__":
    emb_dim = 32
    key = jax.random.PRNGKey(0)

    smat, table_bd, tables = init_bond_encoder_params(emb_dim, key)

    # Small deterministic test: E=16 (exercises tail padding + single-step grid).
    key, k1 = jax.random.split(key)
    edge_attr = _make_edge_attr(k1, 16)
    out = jax.block_until_ready(bond_encoder(edge_attr, smat, table_bd))
    ref = _reference(edge_attr, tables)
    assert out.shape == (16, emb_dim)
    assert jnp.allclose(out, ref, atol=1e-4), "mismatch vs reference (E=16)"

    # Larger test: E=1000 (exercises row padding, multi-step grid, tail slice).
    key, k2 = jax.random.split(key)
    edge_attr2 = _make_edge_attr(k2, 1000)
    out2 = jax.block_until_ready(bond_encoder(edge_attr2, smat, table_bd))
    ref2 = _reference(edge_attr2, tables)
    assert out2.shape == (1000, emb_dim)
    assert jnp.allclose(out2, ref2, atol=1e-4), "mismatch vs reference (E=1000)"

    print("KERNEL_OK")
</pallas_src>

<mosaic_0001>
module attributes {stable_mosaic.version = 11 : i64} {
  func.func @_bond_encoder_kernel(%arg0: i32, %arg1: memref<8x32xi32, #tpu.memory_space<vmem>>, %arg2: memref<32x104xbf16, #tpu.memory_space<vmem>>, %arg3: memref<104x256xf32, #tpu.memory_space<vmem>>, %arg4: memref<8x256xf32, #tpu.memory_space<vmem>>) attributes {dimension_semantics = [#tpu.dimension_semantics<parallel>], iteration_bounds = array<i64: 1>, scalar_prefetch = 0 : i64, scratch_operands = 0 : i64, tpu.core_type = #tpu.core_type<tc>, window_params = [{transform_indices = @transform_0, window_bounds = array<i64: 8, 32>}, {pipeline_mode = #tpu.pipeline_mode<synchronous>, transform_indices = @transform_1, window_bounds = array<i64: 32, 104>}, {pipeline_mode = #tpu.pipeline_mode<synchronous>, transform_indices = @transform_2, window_bounds = array<i64: 104, 256>}, {transform_indices = @transform_3, window_bounds = array<i64: 8, 256>}]} {
    %c0 = arith.constant 0 : index
    %c0_0 = arith.constant 0 : index
    %0 = vector.load %arg1[%c0, %c0_0] : memref<8x32xi32, #tpu.memory_space<vmem>>, vector<8x32xi32>
    %1 = arith.sitofp %0 : vector<8x32xi32> to vector<8x32xbf16>
    %c0_1 = arith.constant 0 : index
    %c0_2 = arith.constant 0 : index
    %2 = vector.load %arg2[%c0_1, %c0_2] : memref<32x104xbf16, #tpu.memory_space<vmem>>, vector<32x104xbf16>
    %cst = arith.constant dense<0.000000e+00> : vector<8x104xf32>
    %3 = tpu.matmul %1, %2, %cst {dimension_numbers = #tpu.dot_dimension_numbers<[1], [0], [0], [1], [0, 0, 1, 1], [], []>} : vector<8x32xbf16>, vector<32x104xbf16>, vector<8x104xf32> -> vector<8x104xf32>
    %4 = tpu.iota {dimensions = array<i32: 1>} : vector<8x104xi32>
    %5 = arith.fptosi %3 : vector<8x104xf32> to vector<8x104xi32>
    %6 = arith.cmpi eq, %4, %5 : vector<8x104xi32>
    %7 = arith.extui %6 : vector<8x104xi1> to vector<8x104xi32>
    %8 = arith.sitofp %7 : vector<8x104xi32> to vector<8x104xf32>
    %c0_3 = arith.constant 0 : index
    %c0_4 = arith.constant 0 : index
    %9 = vector.load %arg3[%c0_3, %c0_4] : memref<104x256xf32, #tpu.memory_space<vmem>>, vector<104x256xf32>
    %cst_5 = arith.constant dense<0.000000e+00> : vector<8x256xf32>
    %10 = tpu.matmul %8, %9, %cst_5 {dimension_numbers = #tpu.dot_dimension_numbers<[1], [0], [0], [1], [0, 0, 1, 1], [], []>, precision = #tpu.contract_precision<fp32>} : vector<8x104xf32>, vector<104x256xf32>, vector<8x256xf32> -> vector<8x256xf32>
    %c0_6 = arith.constant 0 : index
    %c0_7 = arith.constant 0 : index
    %11 = vector.load %arg4[%c0_6, %c0_7] : memref<8x256xf32, #tpu.memory_space<vmem>>, vector<8x256xf32>
    tpu.vector_store %arg4[%c0_6, %c0_7], %10 {strides = array<i32>} : memref<8x256xf32, #tpu.memory_space<vmem>>, vector<8x256xf32>,
    return
  }
  func.func @transform_0(%arg0: i32) -> (i32, i32) {
    %c0_i32 = arith.constant 0 : i32
    %c0_i32_0 = arith.constant 0 : i32
    return %arg0, %c0_i32 : i32, i32
  }
  func.func @transform_1(%arg0: i32) -> (i32, i32) {
    %c0_i32 = arith.constant 0 : i32
    %c0_i32_0 = arith.constant 0 : i32
    %c0_i32_1 = arith.constant 0 : i32
    return %c0_i32, %c0_i32_0 : i32, i32
  }
  func.func @transform_2(%arg0: i32) -> (i32, i32) {
    %c0_i32 = arith.constant 0 : i32
    %c0_i32_0 = arith.constant 0 : i32
    %c0_i32_1 = arith.constant 0 : i32
    return %c0_i32, %c0_i32_0 : i32, i32
  }
  func.func @transform_3(%arg0: i32) -> (i32, i32) {
    %c0_i32 = arith.constant 0 : i32
    %c0_i32_0 = arith.constant 0 : i32
    return %arg0, %c0_i32 : i32, i32
  }
}

</mosaic_0001>

<bundles_post_ra>
// kernel: bond_encoder.1
= control target key start
LH: loop header
LB: loop body
LE: loop exit
PB: predicated region body
PF: predicated region fallthrough
CT: control target
= control target key end

     0   :  { %8 = vsyncpa [#allocation3], 0  ;;  %s1117_s12 = smov [#allocation2]   ;;  %s1488_s0 = inlined_call_operand.vmem [shape: s32[8,32], index: 0, kind: input, shape index: {}]   ;;  %s1489_s1 = inlined_call_operand.vmem [shape: bf16[32,104], index: 1, kind: input, shape index: {}]   ;;  %s1490_s2 = inlined_call_operand.hbm [shape: f32[104,256], index: 2, kind: input, shape index: {}]   ;;  %s1491_s3 = inlined_call_operand.vmem [shape: f32[8,256], index: 3, kind: output, shape index: {}]  }
   0x1   :  { %s18_s13 = sshll.u32 %s1117_s12, 4  ;;  %s1093_s16 = scalar_lea.hbm %s1490_s2, 3328  ;;  %s19_s13 = int_to_ptr.vmem [resolvable:$true] %s18_s13 }
   0x2   :  { %p1094_p0 = scmp.ne.s32.totalorder %s1490_s2, %s1093_s16  ;;  %p1097_p1 = scmp.lt.u32.totalorder %s1093_s16, %s1490_s2 }
   0x4   :  { %p1099_p2 = pnand %p1097_p1, %p1094_p0 }
   0x6   :  { %1102 = shalt.err (!%p1099_p2)
}
   0x7   :  { %s1103_s21 = scalar_lea.vmem %s19_s13, 3328  ;;  %p1108_p4 = scmp.lt.s32.totalorder %s19_s13, %s19_s13 }
   0x8   :  { %p1104_p3 = scmp.ne.s32.totalorder %s19_s13, %s1103_s21  ;;  %p1109_p5 = scmp.lt.s32.totalorder %s1103_s21, %s1103_s21 }
   0xa   :  { %p1110_p6 = por %p1109_p5, %p1108_p4 }
   0xc   :  { %p1111_p7 = pnand %p1110_p6, %p1104_p3 }
   0xe   :  { %1114 = shalt.err (!%p1111_p7)
}
   0xf   :  { %s1118_s22 = smov 256   ;;  %s1119_s23 = smov 16  }
  0x10   :  { %24 = dma.hbm_to_vmem [thread:$0]  %s1490_s2, 3328, %s19_s13, [#allocation3], %s1118_s22, %s1118_s22, %s1119_s23  }
  0x11   :  { %1115 = dma.done.wait [#allocation3], 3328  }
  0x12   :  { %1116 = vsyncadd [#allocation3], 4294963968  ;;  %v1492_v0 = vmov 0.0   ;;  %vm1121_vm0 = vmmov 0   ;;  %v1091_v1 = vld [vmem:[%s1489_s1] sm:$0xff]   ;;  %v1092_v2 = vld [vmem:[%s1489_s1 + $0x8] sm:$0xff]  }
  0x13   :  { %922 = vmatprep.subr.bf16.mxu0 %v1492_v0  ;;  %926 = vmatprep.mubr.msk.bf16.mxu0 %vm1121_vm0, %v1492_v0  ;;  %v29_v3 = vld [vmem:[%s1488_s0] sm:$0xff]  ;;  %v99_v4 = vld [vmem:[#allocation2 + $0x8] sm:$0xff]  ;;  %v101_v5 = vld [vmem:[#allocation2 + $0x18] sm:$0xff]  ;;  %vm48_vm1 = vcmask 261120   ;;  %vm124_vm2 = vcmask 850944  }
  0x14   :  { %647 = vmatprep.mubr.f32.mxu1 %v1492_v0  ;;  %923 = vmatpush3.bf16.msra.mxu0 %v1091_v1  ;;  %v30_v6 = vcvt.s32.f32 %v29_v3  ;;  %v128_v7 = vand.u32 4294901760, %v99_v4  ;;  %v132_v8 = vand.u32 4294901760, %v101_v5  ;;  %v98_v9 = vld [vmem:[#allocation2] sm:$0xff]  ;;  %v100_v10 = vld [vmem:[#allocation2 + $0x10] sm:$0xff]  ;;  %v103_v11 = vld [vmem:[#allocation2 + $0x28] sm:$0xff] }
  0x15   :  { %924 = vmatprep.subr.bf16.mxu0 %v1492_v0  ;;  %v130_v12 = vand.u32 4294901760, %v98_v9  ;;  %v134_v13 = vand.u32 4294901760, %v100_v10  ;;  %v105_v14 = vld [vmem:[#allocation2 + $0x38] sm:$0xff]  ;;  %v136_v15 = vand.u32 4294901760, %v103_v11  ;;  %v102_v16 = vld [vmem:[#allocation2 + $0x20] sm:$0xff]  ;;  %v104_v17 = vld [vmem:[#allocation2 + $0x30] sm:$0xff] }
  0x16   :  { %v31_v18 = vpack.c.bf16 %v30_v6, %v30_v6  ;;  %v1167_v19 = vpack.c.bf16 %v132_v8, %v128_v7  ;;  %v1169_v20 = vsub.f32 %v99_v4, %v128_v7  ;;  %v1171_v21 = vsub.f32 %v101_v5, %v132_v8  ;;  %v107_v22 = vld [vmem:[#allocation2 + $0x48] sm:$0xff]  ;;  %v109_v23 = vld [vmem:[#allocation2 + $0x58] sm:$0xff]  ;;  %v106_v24 = vld [vmem:[#allocation2 + $0x40] sm:$0xff] }
  0x17   :  { %v1173_v25 = vpack.c.bf16 %v134_v13, %v130_v12  ;;  %v1175_v26 = vsub.f32 %v98_v9, %v130_v12  ;;  %v1177_v27 = vsub.f32 %v100_v10, %v134_v13  ;;  %v140_v28 = vand.u32 4294901760, %v105_v14  ;;  %v108_v33 = vld [vmem:[#allocation2 + $0x50] sm:$0xff]  ;;  %v111_v38 = vld [vmem:[#allocation2 + $0x68] sm:$0xff]  ;;  %v113_v39 = vld [vmem:[#allocation2 + $0x78] sm:$0xff] }
  0x18   :  { %1506 = vst [vmem:[#allocation5_spill] sm:$0xff] %v1167_v19  ;;  %925 = vmatpush3.bf16.msra.mxu0 %v1092_v2  ;;  %1003 = vmatprep.subr.bf16.mxu1 %v1167_v19  ;;  %v1181_v29 = vsub.f32 %v103_v11, %v136_v15  ;;  %v138_v30 = vand.u32 4294901760, %v102_v16  ;;  %v142_v31 = vand.u32 4294901760, %v104_v17  ;;  %v144_v32 = vand.u32 4294901760, %v107_v22  ;;  %v110_v44 = vld [vmem:[#allocation2 + $0x60] sm:$0xff]  ;;  %v112_v45 = vld [vmem:[#allocation2 + $0x70] sm:$0xff] }
  0x19   :  { %1507 = vst [vmem:[#allocation6_spill] sm:$0xff] %v1173_v25  ;;  %931 = vmatprep.subr.bf16.mxu0 %v1167_v19  ;;  %1005 = vmatpush1.bf16.msra.mxu1 %v1173_v25  ;;  %v1184_v34 = vpack.c.bf16 %v140_v28, %v136_v15  ;;  %v1186_v35 = vsub.f32 %v105_v14, %v140_v28  ;;  %v148_v36 = vand.u32 4294901760, %v109_v23  ;;  %v146_v37 = vand.u32 4294901760, %v106_v24  ;;  %v115_v62 = vld [vmem:[#allocation2 + $0x88] sm:$0xff]  ;;  %v117_v63 = vld [vmem:[#allocation2 + $0x98] sm:$0xff]  ;;  %v114_v3 = vld [vmem:[#allocation2 + $0x80] sm:$0xff] }
  0x1a   :  { %v1189_v40 = vpack.c.bf16 %v142_v31, %v138_v30  ;;  %v1191_v41 = vsub.f32 %v102_v16, %v138_v30  ;;  %v1193_v42 = vsub.f32 %v104_v17, %v142_v31  ;;  %v1195_v43 = vsub.f32 %v107_v22, %v144_v32  ;;  %v116_v4 = vld [vmem:[#allocation2 + $0x90] sm:$0xff]  ;;  %v119_v9 = vld [vmem:[#allocation2 + $0xa8] sm:$0xff]  ;;  %v121_v10 = vld [vmem:[#allocation2 + $0xb8] sm:$0xff] }
  0x1b   :  { %1508 = vst [vmem:[#allocation7_spill] sm:$0xff] %v1184_v34  ;;  %927 = vmatmul.mubr.msk.bf16.vlgmr.msra.gmra.mrb[0].mxu0 %vm48_vm1, %v31_v18  ;;  %1007 = vmatprep.subr.bf16.mxu1 %v1184_v34  ;;  %v1199_v46 = vpack.c.bf16 %v148_v36, %v144_v32  ;;  %v1201_v47 = vsub.f32 %v109_v23, %v148_v36  ;;  %v150_v48 = vand.u32 4294901760, %v108_v33  ;;  %v152_v50 = vand.u32 4294901760, %v111_v38  ;;  %v118_v13 = vld [vmem:[#allocation2 + $0xa0] sm:$0xff]  ;;  %v120_v14 = vld [vmem:[#allocation2 + $0xb0] sm:$0xff]  ;;  %v1248_v22 = vld [vmem:[#allocation2 + $0xc8] sm:$0xff] }
  0x1c   :  { %1509 = vst [vmem:[#allocation8_spill] sm:$0xff] %v1189_v40  ;;  %933 = vmatpush1.bf16.msra.mxu0 %v1173_v25  ;;  %v1203_v49 = vsub.f32 %v106_v24, %v146_v37  ;;  %v156_v51 = vand.u32 4294901760, %v113_v39  ;;  %218 = vmatprep.mubr.f32.mxu0 %v1492_v0  ;;  %v154_v54 = vand.u32 4294901760, %v110_v44  ;;  %v158_v55 = vand.u32 4294901760, %v112_v45  ;;  %v1254_v24 = vld [vmem:[#allocation2 + $0xc0] sm:$0xff] }
  0x1d   :  { %1510 = vst [vmem:[#allocation9_spill] sm:$0xff] %v1199_v46  ;;  %935 = vmatprep.subr.bf16.mxu0 %v1184_v34  ;;  %1009 = vmatpush1.bf16.msra.mxu1 %v1189_v40  ;;  %v1208_v52 = vpack.c.bf16 %v150_v48, %v146_v37  ;;  %v1210_v53 = vsub.f32 %v108_v33, %v150_v48  ;;  %v160_v1 = vand.u32 4294901760, %v115_v62  ;;  %v164_v2 = vand.u32 4294901760, %v117_v63 }
  0x1e   :  { %1011 = vmatprep.subr.bf16.mxu1 %v1199_v46  ;;  %v1213_v56 = vpack.c.bf16 %v156_v51, %v152_v50  ;;  %v1215_v57 = vsub.f32 %v111_v38, %v152_v50  ;;  %v1217_v58 = vsub.f32 %v113_v39, %v156_v51  ;;  %v1220_v59 = vsub.f32 %v110_v44, %v154_v54 }
  0x1f   :  { %1511 = vst [vmem:[#allocation10_spill] sm:$0xff] %v1208_v52  ;;  %v1222_v60 = vsub.f32 %v112_v45, %v158_v55  ;;  %v1226_v61 = vpack.c.bf16 %v158_v55, %v154_v54  ;;  %v162_v5 = vand.u32 4294901760, %v114_v3  ;;  %v166_v6 = vand.u32 4294901760, %v116_v4 }
  0x20   :  { %1512 = vst [vmem:[#allocation11_spill] sm:$0xff] %v1213_v56  ;;  %937 = vmatpush1.bf16.msra.mxu0 %v1189_v40  ;;  %v1233_v7 = vpack.c.bf16 %v164_v2, %v160_v1  ;;  %v168_v11 = vand.u32 4294901760, %v119_v9  ;;  %v172_v12 = vand.u32 4294901760, %v121_v10  ;;  %v170_v15 = vand.u32 4294901760, %v118_v13 }
  0x21   :  { %939 = vmatprep.subr.bf16.mxu0 %v1199_v46  ;;  %1013 = vmatpush1.bf16.msra.mxu1 %v1208_v52  ;;  %1513 = vst [vmem:[#allocation12_spill] sm:$0xff] %v1226_v61  ;;  %v1235_v8 = vpack.c.bf16 %v166_v6, %v162_v5  ;;  %v174_v16 = vand.u32 4294901760, %v120_v14  ;;  %v1252_v23 = vand.u32 4294901760, %v1248_v22  ;;  %v232_v28 = vand.u32 4294901760, %v1169_v20 }
  0x22   :  { %1015 = vmatprep.subr.bf16.mxu1 %v1213_v56  ;;  %1514 = vst [vmem:[#allocation13_spill] sm:$0xff] %v1233_v7  ;;  %v1241_v17 = vpack.c.bf16 %v172_v12, %v168_v11  ;;  %v244_v30 = vand.u32 4294901760, %v1171_v21  ;;  %v1258_v31 = vsub.f32 %v115_v62, %v160_v1  ;;  %v1260_v32 = vsub.f32 %v117_v63, %v164_v2 }
  0x23   :  { %1515 = vst [vmem:[#allocation14_spill] sm:$0xff] %v1235_v8  ;;  %v1243_v18 = vpack.c.bf16 %v174_v16, %v170_v15  ;;  %v1262_v33 = vsub.f32 %v114_v3, %v162_v5  ;;  %v1264_v36 = vsub.f32 %v116_v4, %v166_v6  ;;  %v1266_v37 = vsub.f32 %v119_v9, %v168_v11 }
  0x24   :  { %941 = vmatpush1.bf16.msra.mxu0 %v1208_v52  ;;  %1516 = vst [vmem:[#allocation15_spill] sm:$0xff] %v1241_v17  ;;  %v1268_v38 = vsub.f32 %v121_v10, %v172_v12  ;;  %v1270_v39 = vsub.f32 %v118_v13, %v170_v15  ;;  %v1272_v44 = vsub.f32 %v120_v14, %v174_v16  ;;  %v1276_v45 = vand.u32 4294901760, %v1254_v24 }
  0x25   :  { %943 = vmatprep.subr.bf16.mxu0 %v1213_v56  ;;  %1017 = vmatpush1.bf16.msra.mxu1 %v1226_v61  ;;  %1517 = vst [vmem:[#allocation16_spill] sm:$0xff] %v1243_v18  ;;  %v1026_v48 = vpack.c.bf16 %v244_v30, %v232_v28  ;;  %v238_v50 = vand.u32 4294901760, %v1175_v26  ;;  %v250_v51 = vand.u32 4294901760, %v1177_v27  ;;  %v233_v54 = vsub.f32 %v1169_v20, %v232_v28 }
  0x26   :  { %1019 = vmatprep.subr.bf16.mxu1 %v1233_v7  ;;  %v245_v55 = vsub.f32 %v1171_v21, %v244_v30  ;;  %v256_v63 = vand.u32 4294901760, %v1181_v29  ;;  %v268_v1 = vand.u32 4294901760, %v1186_v35  ;;  %v262_v9 = vand.u32 4294901760, %v1191_v41 }
  0x27   :  { %v1284_v62 = vpack.c.bf16 %v250_v51, %v238_v50  ;;  %v234_v2 = vand.u32 4294901760, %v233_v54  ;;  %v239_v4 = vsub.f32 %v1175_v26, %v238_v50  ;;  %v251_v5 = vsub.f32 %v1177_v27, %v250_v51 }
  0x28   :  { %945 = vmatpush1.bf16.msra.mxu0 %v1226_v61  ;;  %v246_v3 = vand.u32 4294901760, %v245_v55  ;;  %v1291_v6 = vpack.c.bf16 %v268_v1, %v256_v63  ;;  %v274_v10 = vand.u32 4294901760, %v1193_v42  ;;  %v257_v11 = vsub.f32 %v1181_v29, %v256_v63 }
  0x29   :  { %947 = vmatprep.subr.bf16.mxu0 %v1233_v7  ;;  %1021 = vmatpush1.bf16.msra.mxu1 %v1235_v8  ;;  %v240_v13 = vand.u32 4294901760, %v239_v4  ;;  %v252_v14 = vand.u32 4294901760, %v251_v5  ;;  %v269_v15 = vsub.f32 %v1186_v35, %v268_v1  ;;  %v280_v30 = vand.u32 4294901760, %v1195_v43 }
  0x2a   :  { %1023 = vmatprep.subr.bf16.mxu1 %v1241_v17  ;;  %v954_v12 = vpack.c.bf16 %v246_v3, %v234_v2  ;;  %v1297_v16 = vpack.c.bf16 %v274_v10, %v262_v9  ;;  %v258_v28 = vand.u32 4294901760, %v257_v11  ;;  %v263_v54 = vsub.f32 %v1191_v41, %v262_v9 }
  0x2b   :  { %v1301_v50 = vpack.c.bf16 %v252_v14, %v240_v13  ;;  %v270_v51 = vand.u32 4294901760, %v269_v15  ;;  %v275_v55 = vsub.f32 %v1193_v42, %v274_v10  ;;  %v286_v2 = vand.u32 4294901760, %v1203_v49 }
  0x2c   :  { %949 = vmatpush1.bf16.msra.mxu0 %v1235_v8  ;;  %v298_v1 = vand.u32 4294901760, %v1210_v53  ;;  %v281_v3 = vsub.f32 %v1195_v43, %v280_v30  ;;  %v264_v5 = vand.u32 4294901760, %v263_v54  ;;  %v304_v9 = vand.u32 4294901760, %v1215_v57 }
  0x2d   :  { %951 = vmatprep.subr.bf16.mxu0 %v1241_v17  ;;  %1025 = vmatpush1.bf16.msra.mxu1 %v1243_v18  ;;  %v1310_v4 = vpack.c.bf16 %v270_v51, %v258_v28  ;;  %v276_v11 = vand.u32 4294901760, %v275_v55  ;;  %v316_v10 = vand.u32 4294901760, %v1217_v58  ;;  %v310_v51 = vand.u32 4294901760, %v1220_v59 }
  0x2e   :  { %606 = vmatprep.subr.mxu1 %v1252_v23  ;;  %v1313_v13 = vpack.c.bf16 %v298_v1, %v286_v2  ;;  %v282_v14 = vand.u32 4294901760, %v281_v3  ;;  %v305_v54 = vsub.f32 %v1215_v57, %v304_v9 }
  0x2f   :  { %v1317_v15 = vpack.c.bf16 %v276_v11, %v264_v5  ;;  %v1321_v28 = vpack.c.bf16 %v316_v10, %v304_v9  ;;  %v317_v5 = vsub.f32 %v1217_v58, %v316_v10  ;;  %v311_v61 = vsub.f32 %v1220_v59, %v310_v51 }
  0x30   :  { %953 = vmatpush1.bf16.msra.mxu0 %v1243_v18  ;;  %v287_v18 = vsub.f32 %v1203_v49, %v286_v2  ;;  %v328_v2 = vand.u32 4294901760, %v1258_v31 }
  0x31   :  { %177 = vmatprep.subr.mxu0 %v1252_v23  ;;  %608 = vmatpush1.msra.mxu1 %v1276_v45  ;;  %v318_v7 = vand.u32 4294901760, %v317_v5 }
  0x32   :  { %1027 = vmatprep.subr.bf16.mxu1 %v1026_v48  ;;  %v292_v48 = vand.u32 4294901760, %v1201_v47  ;;  %v288_v3 = vand.u32 4294901760, %v287_v18  ;;  %v334_v18 = vand.u32 4294901760, %v1262_v33  ;;  %v329_v10 = vsub.f32 %v1258_v31, %v328_v2 }
  0x34   :  { %179 = vmatpush1.msra.mxu0 %v1276_v45  ;;  %v1305_v63 = vpack.c.bf16 %v292_v48, %v280_v30  ;;  %v299_v30 = vsub.f32 %v1210_v53, %v298_v1  ;;  %v340_v1 = vand.u32 4294901760, %v1260_v32  ;;  %v330_v5 = vand.u32 4294901760, %v329_v10 }
  0x35   :  { %955 = vmatprep.subr.bf16.mxu0 %v954_v12  ;;  %v293_v12 = vsub.f32 %v1201_v47, %v292_v48  ;;  %v322_v48 = vand.u32 4294901760, %v1222_v60  ;;  %v335_v40 = vsub.f32 %v1262_v33, %v334_v18 }
  0x36   :  { %v300_v17 = vand.u32 4294901760, %v299_v30 }
  0x37   :  { %v294_v0 = vand.u32 4294901760, %v293_v12  ;;  %v1329_v11 = vpack.c.bf16 %v322_v48, %v310_v51  ;;  %v306_v12 = vand.u32 4294901760, %v305_v54  ;;  %v323_v9 = vsub.f32 %v1222_v60, %v322_v48 }
  0x38   :  { %v1333_v8 = vpack.c.bf16 %v300_v17, %v288_v3  ;;  %v312_v54 = vand.u32 4294901760, %v311_v61  ;;  %v341_v17 = vsub.f32 %v1260_v32, %v340_v1  ;;  %v352_v51 = vand.u32 4294901760, %v1266_v37 }
  0x39   :  { %v1326_v55 = vpack.c.bf16 %v294_v0, %v282_v14  ;;  %v1337_v0 = vpack.c.bf16 %v340_v1, %v328_v2  ;;  %v346_v14 = vand.u32 4294901760, %v1264_v36  ;;  %v1342_v30 = vpack.c.bf16 %v318_v7, %v306_v12 }
  0x3a   :  { %v324_v56 = vand.u32 4294901760, %v323_v9  ;;  %v364_v48 = vand.u32 4294901760, %v1268_v38  ;;  %v342_v46 = vand.u32 4294901760, %v341_v17  ;;  %v358_v61 = vand.u32 4294901760, %v1270_v39 }
  0x3b   :  { %1518 = vst [vmem:[#allocation17_spill] sm:$0xff] %v1337_v0  ;;  %v1345_v3 = vpack.c.bf16 %v346_v14, %v334_v18  ;;  %v347_v2 = vsub.f32 %v1264_v36, %v346_v14  ;;  %v370_v12 = vand.u32 4294901760, %v1272_v44  ;;  %v353_v1 = vsub.f32 %v1266_v37, %v352_v51 }
  0x3c   :  { %v1349_v52 = vpack.c.bf16 %v324_v56, %v312_v54  ;;  %v1353_v7 = vpack.c.bf16 %v364_v48, %v352_v51  ;;  %v1358_v9 = vpack.c.bf16 %v342_v46, %v330_v5  ;;  %v336_v10 = vand.u32 4294901760, %v335_v40 }
  0x3d   :  { %1519 = vst [vmem:[#allocation18_spill] sm:$0xff] %v1345_v3  ;;  %v348_v34 = vand.u32 4294901760, %v347_v2  ;;  %v365_v56 = vsub.f32 %v1268_v38, %v364_v48  ;;  %v1361_v54 = vpack.c.bf16 %v370_v12, %v358_v61  ;;  %v354_v17 = vand.u32 4294901760, %v353_v1 }
  0x3e   :  { %1520 = vst [vmem:[#allocation19_spill] sm:$0xff] %v1349_v52  ;;  %1521 = vst [vmem:[#allocation20_spill] sm:$0xff] %v1353_v7  ;;  %v359_v18 = vsub.f32 %v1270_v39, %v358_v61  ;;  %v371_v19 = vsub.f32 %v1272_v44, %v370_v12  ;;  %v978_v46 = vpack.c.bf16 %v1171_v21, %v1169_v20  ;;  %v92_v12 = vlaneseq  ;;  %v1532_v20 = vld [vmem:[#allocation10_spill] sm:$0xff] }
  0x3f   :  { %v972_v14 = vpack.c.bf16 %v348_v34, %v336_v10  ;;  %v366_v25 = vand.u32 4294901760, %v365_v56  ;;  %v980_v40 = vpack.c.bf16 %v1177_v27, %v1175_v26  ;;  %v982_v5 = vpack.c.bf16 %v1186_v35, %v1181_v29  ;;  %v1534_v26 = vld [vmem:[#allocation11_spill] sm:$0xff]  ;;  %v1536_v29 = vld [vmem:[#allocation12_spill] sm:$0xff] }
  0x40   :  { %v360_v7 = vand.u32 4294901760, %v359_v18  ;;  %v372_v52 = vand.u32 4294901760, %v371_v19  ;;  %v984_v51 = vpack.c.bf16 %v1193_v42, %v1191_v41  ;;  %v93_v10 = vand.u32 127, %v92_v12  ;;  %v1538_v41 = vld [vmem:[#allocation13_spill] sm:$0xff] }
  0x41   :  { %v974_v3 = vpack.c.bf16 %v366_v25, %v354_v17  ;;  %v1522_v48 = vmov 0.0   ;;  %v1533_v21 = vpack.c.bf16 %v1201_v47, %v1195_v43  ;;  %v1535_v27 = vpack.c.bf16 %v1210_v53, %v1203_v49  ;;  %v1540_v43 = vld [vmem:[#allocation14_spill] sm:$0xff]  ;;  %v1542_v49 = vld [vmem:[#allocation15_spill] sm:$0xff] }
  0x42   :  { %v976_v0 = vpack.c.bf16 %v372_v52, %v360_v7  ;;  %v1537_v35 = vpack.c.bf16 %v1217_v58, %v1215_v57  ;;  %v1539_v42 = vpack.c.bf16 %v1222_v60, %v1220_v59  ;;  %v1541_v47 = vpack.c.bf16 %v1260_v32, %v1258_v31  ;;  %v1544_v57 = vld [vmem:[#allocation16_spill] sm:$0xff] }
  0x43   :  { %v1543_v53 = vpack.c.bf16 %v1264_v36, %v1262_v33  ;;  %v1545_v58 = vpack.c.bf16 %v1268_v38, %v1266_v37  ;;  %v1546_v59 = vpack.c.bf16 %v1272_v44, %v1270_v39 }
  0xee   :  { %v86_v1 = vpop.f32.mrb[0].mxu0 }
  0xef   :  { %v1084_v56 = vtrunc.f32 %v86_v1  ;;  %v928_v17 = vpop.f32.mrb[1].mxu0 }
  0xf0   :  { %v89_v18 = vpop.f32.mrb[2].mxu0 }
  0xf1   :  { %v1085_v19 = vcvt.f32.s32 %v1084_v56  ;;  %v929_v52 = vpop.f32.mrb[3].mxu0 }
  0xf3   :  { %vm95_vm3 = vcmp.eq.s32.totalorder %v93_v10, %v1085_v19 }
  0xf4   :  { %v1390_v25 = vsel %vm95_vm3, 1.0, %v1522_v48 }
  0xf5   :  { %v126_v2 = vsel %vm124_vm2, %v1390_v25, 0 }
  0xf6   :  { %v1394_v7 = vsub.f32 %v126_v2, %v126_v2 }
  0xf8   :  { %v221_v61 = vand.u32 4294901760, %v1394_v7 }
  0xfa   :  { %v222_v34 = vsub.f32 %v1394_v7, %v221_v61  ;;  %651 = vmatmul.mubr.f32.vlgmr.msra.gmra.mrb[0].mxu1 %v221_v61 }
  0xfb   :  { %1029 = vmatpush1.bf16.msra.mxu1 %v1284_v62  ;;  %799 = vmatprep.mubr.f32.mxu1 %v1522_v48  ;;  %v375_v62 = vsub.f32 %v1248_v22, %v1252_v23  ;;  %v1526_v22 = vld [vmem:[#allocation20_spill] sm:$0xff] }
  0xfc   :  { %v223_v52 = vand.u32 4294901760, %v222_v34  ;;  %1031 = vmatprep.subr.bf16.mxu1 %v1291_v6  ;;  %v381_v6 = vsub.f32 %v1254_v24, %v1276_v45 }
  0xfe   :  { %224 = vmatmul.mubr.f32.vlgmr.msra.gmra.mrb[4].mxu0 %v223_v52 }
  0xff   :  { %957 = vmatpush1.bf16.msra.mxu0 %v1301_v50  ;;  %1033 = vmatpush1.bf16.msra.mxu1 %v1297_v16  ;;  %v1523_v16 = vld [vmem:[#allocation17_spill] sm:$0xff]  ;;  %v376_v50 = vand.u32 4294901760, %v375_v62 }
 0x100   :  { %959 = vmatprep.subr.bf16.mxu0 %v1310_v4  ;;  %1035 = vmatprep.subr.bf16.mxu1 %v1305_v63  ;;  %v1524_v63 = vld [vmem:[#allocation19_spill] sm:$0xff]  ;;  %v1525_v4 = vld [vmem:[#allocation18_spill] sm:$0xff] }
 0x101   :  { %424 = vmatprep.mubr.f32.mxu0 %v1522_v48 }
 0x103   :  { %961 = vmatpush1.bf16.msra.mxu0 %v1317_v15  ;;  %1037 = vmatpush1.bf16.msra.mxu1 %v1313_v13  ;;  %v382_v13 = vand.u32 4294901760, %v381_v6  ;;  %v377_v15 = vsub.f32 %v375_v62, %v376_v50 }
 0x104   :  { %963 = vmatprep.subr.bf16.mxu0 %v1326_v55  ;;  %1039 = vmatprep.subr.bf16.mxu1 %v1321_v28  ;;  %v1527_v55 = vld [vmem:[#allocation5_spill] sm:$0xff] }
 0x105   :  { %v378_v24 = vand.u32 4294901760, %v377_v15 }
 0x107   :  { %965 = vmatpush1.bf16.msra.mxu0 %v1333_v8  ;;  %1041 = vmatpush1.bf16.msra.mxu1 %v1329_v11  ;;  %v383_v8 = vsub.f32 %v381_v6, %v382_v13  ;;  %v1528_v11 = vld [vmem:[#allocation6_spill] sm:$0xff] }
 0x108   :  { %967 = vmatprep.subr.bf16.mxu0 %v1342_v30  ;;  %1043 = vmatprep.subr.bf16.mxu1 %v1523_v16  ;;  %v1529_v30 = vld [vmem:[#allocation7_spill] sm:$0xff] }
 0x109   :  { %v384_v28 = vand.u32 4294901760, %v383_v8 }
 0x10b   :  { %969 = vmatpush1.bf16.msra.mxu0 %v1524_v63  ;;  %1045 = vmatpush1.bf16.msra.mxu1 %v1525_v4 }
 0x10c   :  { %971 = vmatprep.subr.bf16.mxu0 %v1358_v9  ;;  %1047 = vmatprep.subr.bf16.mxu1 %v1526_v22 }
 0x10f   :  { %973 = vmatpush1.bf16.msra.mxu0 %v972_v14  ;;  %1049 = vmatpush1.bf16.msra.mxu1 %v1361_v54 }
 0x110   :  { %975 = vmatprep.subr.bf16.mxu0 %v974_v3  ;;  %756 = vmatprep.subr.mxu1 %v376_v50  ;;  %v1531_v3 = vld [vmem:[#allocation9_spill] sm:$0xff] }
 0x113   :  { %977 = vmatpush1.bf16.msra.mxu0 %v976_v0  ;;  %760 = vmatpush1.msra.mxu1 %v382_v13  ;;  %v1530_v0 = vld [vmem:[#allocation8_spill] sm:$0xff] }
 0x114   :  { %917 = vmatmul.mubr.msk.f32.vlgmr.msra.gmra.mrb[0].mxu1 %vm124_vm2, %v1390_v25  ;;  %1051 = vmatprep.subr.bf16.mxu1 %v1527_v55 }
 0x115   :  { %1053 = vmatpush1.bf16.msra.mxu1 %v1528_v11  ;;  %379 = vmatprep.subr.mxu0 %v378_v24 }
 0x116   :  { %1055 = vmatprep.subr.bf16.mxu1 %v1529_v30  ;;  %897 = vmatprep.mubr.f32.mxu1 %v1522_v48 }
 0x117   :  { %385 = vmatpush1.msra.mxu0 %v384_v28 }
 0x118   :  { %916 = vmatmul.mubr.msk.f32.vlgmr.msra.gmra.mrb[4].mxu0 %vm124_vm2, %v1390_v25  ;;  %979 = vmatprep.subr.bf16.mxu0 %v978_v46 }
 0x119   :  { %981 = vmatpush1.bf16.msra.mxu0 %v980_v40  ;;  %1057 = vmatpush1.bf16.msra.mxu1 %v1530_v0 }
 0x11a   :  { %983 = vmatprep.subr.bf16.mxu0 %v982_v5  ;;  %1059 = vmatprep.subr.bf16.mxu1 %v1531_v3 }
 0x11b   :  { %548 = vmatprep.mubr.f32.mxu0 %v1522_v48 }
 0x11d   :  { %985 = vmatpush1.bf16.msra.mxu0 %v984_v51  ;;  %1061 = vmatpush1.bf16.msra.mxu1 %v1532_v20 }
 0x11e   :  { %987 = vmatprep.subr.bf16.mxu0 %v1533_v21  ;;  %1063 = vmatprep.subr.bf16.mxu1 %v1534_v26 }
 0x121   :  { %989 = vmatpush1.bf16.msra.mxu0 %v1535_v27  ;;  %1065 = vmatpush1.bf16.msra.mxu1 %v1536_v29 }
 0x122   :  { %991 = vmatprep.subr.bf16.mxu0 %v1537_v35  ;;  %1067 = vmatprep.subr.bf16.mxu1 %v1538_v41 }
 0x125   :  { %993 = vmatpush1.bf16.msra.mxu0 %v1539_v42  ;;  %1069 = vmatpush1.bf16.msra.mxu1 %v1540_v43 }
 0x126   :  { %995 = vmatprep.subr.bf16.mxu0 %v1541_v47  ;;  %1071 = vmatprep.subr.bf16.mxu1 %v1542_v49 }
 0x129   :  { %997 = vmatpush1.bf16.msra.mxu0 %v1543_v53  ;;  %1073 = vmatpush1.bf16.msra.mxu1 %v1544_v57 }
 0x12a   :  { %999 = vmatprep.subr.bf16.mxu0 %v1545_v58  ;;  %856 = vmatprep.subr.mxu1 %v1252_v23 }
 0x12d   :  { %1001 = vmatpush1.bf16.msra.mxu0 %v1546_v59  ;;  %858 = vmatpush1.msra.mxu1 %v1276_v45 }
 0x12e   :  { %918 = vmatmul.mubr.msk.f32.vlgmr.msra.gmra.mrb[0].mxu1 %vm124_vm2, %v1390_v25  ;;  %506 = vmatprep.subr.mxu0 %v375_v62 }
 0x131   :  { %509 = vmatpush1.msra.mxu0 %v381_v6 }
 0x132   :  { %551 = vmatmul.mubr.f32.vlgmr.msra.gmra.mrb[4].mxu0 %v1394_v7 }
 0x201   :  { %v900_v60 = vpop.f32.mrb[0].mxu1 }
 0x202   :  { %v902_v31 = vpop.f32.mrb[1].mxu1 }
 0x205   :  { %v552_v32 = vpop.f32.mrb[4].mxu0 }
 0x206   :  { %v1074_v33 = vadd.f32 %v900_v60, %v552_v32  ;;  %v554_v36 = vpop.f32.mrb[5].mxu0 }
 0x207   :  { %v1075_v37 = vadd.f32 %v902_v31, %v554_v36 }
 0x208   :  { %905 = vst [vmem:[%s1491_s3] sm:$0xff] %v1074_v33 }
 0x209   :  { %906 = vst [vmem:[%s1491_s3 + $0x8] sm:$0xff] %v1075_v37 }
 0x20a   :  { %911 = vsyncpa [#allocation3], 1 }

</bundles_post_ra>
